<compile_context>
chip_gen: v7x
topology: tpu7x:2x2x1
jax: 0.10.0
libtpu: 0.0.40
codegen_flags: <defaults>
</compile_context>

<pallas_src>
import math

import jax
import jax.numpy as jnp
from jax import lax
from jax.experimental import pallas as pl
from jax.experimental.pallas import tpu as pltpu


def _device_vmem_bytes():
    """Physical per-core VMEM, generation aware; conservative fallback = v7x's 64 MiB."""
    try:
        info = pltpu.get_tpu_info()
        for attr in ("vmem_capacity_bytes", "vmem_size_bytes", "vmem_bytes"):
            v = getattr(info, attr, None)
            if v:
                return int(v)
    except Exception:
        pass
    return 64 << 20


def _pick_target_tile(n, per_lane_bytes, fixed_bytes, budget):
    """Largest lane-aligned target-point tile TB dividing N whose estimated VMEM working set
    (pipelined I/O buffers + in-kernel [N, TB] temporaries) fits `budget`."""
    if n * per_lane_bytes + fixed_bytes <= budget:
        return n                                   # whole target axis in one block
    for tb in (4096, 2048, 1024, 512, 256, 128):   # largest fitting lane-aligned divisor
        if tb < n and n % tb == 0 and tb * per_lane_bytes + fixed_bytes <= budget:
            return tb
    for tb in (128, 256, 512, 1024, 2048, 4096):   # nothing fits: smallest aligned divisor
        if tb < n and n % tb == 0:
            return tb
    # TODO(synk): very large N that is not a multiple of 128 also needs source-axis chunking.
    return n


def _make_point_norm_block_kernel(radii, sigma, m0, m1, *, has_mask, factorized, eps=1e-8):
    """Build the fused Pallas kernel body (closure over static hyper-params)."""
    n_rad = len(radii)
    inv_sig2 = 1.0 / (sigma * sigma)
    eps2 = eps * eps
    rho0 = float(radii[0])
    delta = float(radii[1]) - float(radii[0]) if n_rad > 1 else 0.0
    r_clip = float(radii[-1]) + 9.0 * sigma        # beyond this every radial window ~ exp(-40)

    def body(a0_ref, a1_ref, bias_ref, diff_ref, mask_ref, o_ref):
        # Source-major tiles: sublanes = source point a (all N), lanes = target point b (TB).
        # diff tile holds diff_M[n, :, a, b] = -(pts[a] - pts[b]); the -1 is folded into a1 in
        # the wrapper (r and |r| are sign independent).
        dx = diff_ref[0, 0].astype(jnp.float32)    # [N, TB]
        dy = diff_ref[0, 1].astype(jnp.float32)
        dz = diff_ref[0, 2].astype(jnp.float32)

        r2 = dx * dx + dy * dy + dz * dz
        inv_r = jnp.where(r2 > eps2, lax.rsqrt(r2), 0.0)   # 0 where r == 0 (diagonal)
        r = r2 * inv_r
        if m1 > 0:
            uy = dy * inv_r                        # se3cnn real-Y1 ordering (y, z, x);
            uz = dz * inv_r                        # the sh1 scale is folded into a1
            ux = dx * inv_r

        maskf = mask_ref[0].astype(jnp.float32) if has_mask else None

        if factorized:
            # g_j = exp(-(r - rho_j)^2 / (2 sigma^2)) = base * step^j * c_j (c_j folded into
            # the weights): 2 transcendentals per (a, b) pair instead of n_rad, mask applied
            # once.  r is clamped where every window is ~0 anyway to keep step^j finite.
            t = jnp.minimum(r, r_clip) - rho0
            base = jnp.exp((-0.5 * inv_sig2) * (t * t))
            if has_mask:
                base = base * maskf
            step = jnp.exp((delta * inv_sig2) * t) if n_rad > 1 else None

        acc0 = None
        accy = accz = accx = None
        g = None
        for j in range(n_rad):                     # static, small radial loop
            if factorized:
                g = base if j == 0 else g * step
            else:
                d = r - float(radii[j])
                g = jnp.exp((-0.5 * inv_sig2) * (d * d))
                if has_mask:
                    g = g * maskf
            gb = g.astype(jnp.bfloat16)
            if m0 > 0:
                # [m0, N] @ [N, TB] -> [m0, TB]: tiny capsule dim on the LHS rows; result is
                # already capsule-major / lane-dense over target points (no transposes).
                t0 = jnp.dot(a0_ref[0, j], gb, preferred_element_type=jnp.float32)
                acc0 = t0 if acc0 is None else acc0 + t0
            if m1 > 0:
                a1 = a1_ref[0, j]                  # [m1, N] bf16
                ty = jnp.dot(a1, (g * uy).astype(jnp.bfloat16),
                             preferred_element_type=jnp.float32)
                tz = jnp.dot(a1, (g * uz).astype(jnp.bfloat16),
                             preferred_element_type=jnp.float32)
                tx = jnp.dot(a1, (g * ux).astype(jnp.bfloat16),
                             preferred_element_type=jnp.float32)
                if accy is None:
                    accy, accz, accx = ty, tz, tx
                else:
                    accy, accz, accx = accy + ty, accz + tz, accx + tx

        # Assemble the full [c_out, TB] block and store it once (single lane-dense store).
        rows = []
        if m0 > 0:
            rows.append(jnp.maximum(acc0, 0.0))    # l=0 capsules: plain scalar activation
        if m1 > 0:
            n2 = accy * accy + accz * accz + accx * accx
            inv_n = jnp.where(n2 > 0.0, lax.rsqrt(n2), 0.0)
            norm = n2 * inv_n
            # NormSoftplus gate for all 3-dim capsules at once: x * act(||x|| - bias) / ||x||
            factor = jnp.maximum(norm - bias_ref[...], 0.0) * inv_n            # [m1, TB]
            caps = jnp.stack([accy * factor, accz * factor, accx * factor], axis=1)
            rows.append(caps.reshape(3 * m1, caps.shape[-1]))
        out = rows[0] if len(rows) == 1 else jnp.concatenate(rows, axis=0)     # [c_out, TB]
        o_ref[0, :, :] = out.astype(o_ref.dtype)

    if has_mask:
        def kernel(a0_ref, a1_ref, bias_ref, diff_ref, mask_ref, o_ref):
            body(a0_ref, a1_ref, bias_ref, diff_ref, mask_ref, o_ref)
    else:
        def kernel(a0_ref, a1_ref, bias_ref, diff_ref, o_ref):
            body(a0_ref, a1_ref, bias_ref, diff_ref, None, o_ref)
    return kernel


def point_norm_block_forward(x, diff_M, relative_mask, params, *,
                             repr_in, repr_out, radii, sigma=0.6):
    assert len(repr_in) == 1, "only scalar (l=0) input representations supported"
    B, c_in, N = x.shape
    m0 = repr_out[0]
    m1 = repr_out[1] if len(repr_out) > 1 else 0
    n_rad = len(radii)
    c_out = m0 + 3 * m1
    f32, bf16 = jnp.float32, jnp.bfloat16
    has_mask = relative_mask is not None

    inv_sig2 = 1.0 / (sigma * sigma)
    sh0 = 1.0 / math.sqrt(4.0 * math.pi)                    # Y_0
    sh1 = math.sqrt(3.0 / (4.0 * math.pi))                  # |Y_1| scale
    gauss_norm = 1.0 / (sigma * math.sqrt(2.0 * math.pi))   # radial window normalization

    # Gaussian factorization is used when radii are equally spaced and the intermediate
    # base*step^j terms cannot overflow f32 (r is clamped in-kernel past the last window).
    rho0 = float(radii[0])
    delta = float(radii[1]) - float(radii[0]) if n_rad > 1 else 0.0
    r_clip = float(radii[-1]) + 9.0 * sigma
    equally_spaced = all(abs((float(radii[j + 1]) - float(radii[j])) - delta)
                         < 1e-6 * max(abs(delta), 1.0) for j in range(n_rad - 1))
    factorized = (n_rad == 1) or (
        equally_spaced
        and (n_rad - 1) * delta * inv_sig2 * max(r_clip - rho0, 0.0) < 80.0
        and 0.5 * ((n_rad - 1) * delta) ** 2 * inv_sig2 < 80.0)
    if factorized:
        c_fold = jnp.asarray([math.exp(-0.5 * (j * delta) ** 2 * inv_sig2)
                              for j in range(n_rad)], f32)
    else:
        c_fold = jnp.ones((n_rad,), f32)

    m0p, m1p = max(m0, 1), max(m1, 1)
    xf = x.astype(f32)

    # Fold weights + constant scales into x once (cheap O(N) work), N-minor so the weight
    # tiles are lane dense and directly usable as the [m, N] matmul LHS:
    #   a0[n, j, u, a] =  sh0 * gauss_norm * c_j * sum_v w0[u, v, j] * x[n, v, a]
    #   a1[n, j, u, a] = -sh1 * gauss_norm * c_j * sum_v w1[u, v, j] * x[n, v, a]
    # (the -1 absorbs the antisymmetry sign of the source-major diff_M tiles).
    if m0 > 0:
        a0 = jnp.einsum("uvj,nva->njua", params["w0"].astype(f32), xf)
        a0 = (a0 * (sh0 * gauss_norm) * c_fold[None, :, None, None]).astype(bf16)
    else:
        a0 = jnp.zeros((B, n_rad, 1, N), bf16)
    if m1 > 0:
        a1 = jnp.einsum("uvj,nva->njua", params["w1"].astype(f32), xf)
        a1 = (a1 * (-sh1 * gauss_norm) * c_fold[None, :, None, None]).astype(bf16)
        bias2d = params["bias"].astype(f32).reshape(m1, 1)
    else:
        a1 = jnp.zeros((B, n_rad, 1, N), bf16)
        bias2d = jnp.zeros((1, 1), f32)

    # N^2 HBM streams in bf16.  diff_M is sliced on its last (source-major) axis, relying on
    # its antisymmetry (diff_M[n,:,b,a] = -diff_M[n,:,a,b], true for se3cnn pairwise diffs);
    # the mask is transposed once outside the kernel so no symmetry assumption is needed.
    diff_bf = diff_M.astype(bf16)
    mask_t = jnp.transpose(relative_mask, (0, 2, 1)).astype(bf16) if has_mask else None

    # --- generation-aware tiling / VMEM budgeting --------------------------------------
    dev_vmem = _device_vmem_bytes()
    budget = int(0.6 * dev_vmem)                   # leave headroom for Mosaic scratch
    c_pad = -(-c_out // 8) * 8
    # bytes per target-point lane: double-buffered bf16 diff (+mask) I/O plus ~12 live
    # [N, TB] f32-equivalents of in-kernel temporaries (dx/dy/dz, r2/1/r, u*, base/step/g,
    # bf16 matmul casts) plus the double-buffered output tile.
    per_lane = (12 + (4 if has_mask else 0) + 48) * N + 8 * c_pad
    fixed = 2 * 2 * n_rad * ((-(-m0p // 8) + -(-m1p // 8)) * 8) * N * 2 + (2 << 20)
    tb = _pick_target_tile(N, per_lane, fixed, budget)
    est_total = tb * per_lane + fixed
    vmem_limit = int(min(dev_vmem - (4 << 20), max(32 << 20, est_total + (8 << 20))))

    kernel = _make_point_norm_block_kernel(radii, sigma, m0, m1,
                                           has_mask=has_mask, factorized=factorized)

    in_specs = [
        pl.BlockSpec((1, n_rad, m0p, N), lambda n, b: (n, 0, 0, 0)),   # a0 (N-minor, bf16)
        pl.BlockSpec((1, n_rad, m1p, N), lambda n, b: (n, 0, 0, 0)),   # a1 (N-minor, bf16)
        pl.BlockSpec((m1p, 1), lambda n, b: (0, 0)),                   # NormSoftplus bias
        pl.BlockSpec((1, 3, N, tb), lambda n, b: (n, 0, 0, b)),        # diff tile [N, TB]
    ]
    inputs = [a0, a1, bias2d, diff_bf]
    if has_mask:
        in_specs.append(pl.BlockSpec((1, N, tb), lambda n, b: (n, 0, b)))  # mask^T tile
        inputs.append(mask_t)

    n_exp = 2 if factorized else n_rad
    cost = pl.CostEstimate(
        flops=int(2 * (m0 + 3 * m1) * n_rad * N * N * B + 30 * N * N * B),
        transcendentals=int(B * N * N * (n_exp + 1)),
        bytes_accessed=int(B * ((3 + (1 if has_mask else 0)) * N * N * 2
                                + 2 * n_rad * (m0p + m1p) * N + 4 * c_out * N)),
    )

    grid_spec = pltpu.PrefetchScalarGridSpec(
        num_scalar_prefetch=0,
        grid=(B, N // tb),
        in_specs=in_specs,
        out_specs=pl.BlockSpec((1, c_out, tb), lambda n, b: (n, 0, b)),
    )

    return pl.pallas_call(
        kernel,
        out_shape=jax.ShapeDtypeStruct((B, c_out, N), x.dtype),
        grid_spec=grid_spec,
        compiler_params=pltpu.CompilerParams(
            dimension_semantics=("parallel", "parallel"),
            vmem_limit_bytes=vmem_limit),
        cost_estimate=cost,
    )(*inputs)


def _reference_forward(x, diff_M, relative_mask, params, *, repr_out, radii,
                       sigma=0.6, eps=1e-8):
    """Plain-JAX mirror of the PyTorch forward (materializes kernel, einsum 'nca,dcnba->ndb')."""
    w0, w1, bias = params["w0"], params["w1"], params["bias"]
    m0 = repr_out[0]
    m1 = repr_out[1] if len(repr_out) > 1 else 0
    sh0 = 1.0 / math.sqrt(4.0 * math.pi)
    sh1 = math.sqrt(3.0 / (4.0 * math.pi))

    dx, dy, dz = diff_M[:, 0], diff_M[:, 1], diff_M[:, 2]            # [B, N, N]
    r = jnp.sqrt(dx * dx + dy * dy + dz * dz)
    inv_r = jnp.where(r > eps, 1.0 / jnp.maximum(r, eps), 0.0)
    rb = jnp.stack(
        [jnp.exp(-0.5 * ((r - rad) / sigma) ** 2) / (sigma * math.sqrt(2.0 * math.pi))
         for rad in radii], axis=1)                                  # [B, R, N, N]
    y1 = sh1 * jnp.stack([dy * inv_r, dz * inv_r, dx * inv_r], axis=1)  # [B, 3, N, N]

    k00 = sh0 * jnp.einsum("uvj,njba->uvnba", w0, rb)                # [m0, C_in, B, N, N]
    blocks = [k00]
    if m1 > 0:
        k10 = jnp.einsum("uvj,njba,nmba->umvnba", w1, rb, y1)        # [m1, 3, C_in, B, N, N]
        k10 = k10.reshape(m1 * 3, w1.shape[1], *k10.shape[3:])
        blocks.append(k10)
    K = jnp.concatenate(blocks, axis=0)                              # [C_out, C_in, B, N, N]
    if relative_mask is not None:
        K = jnp.einsum("nba,dcnba->dcnba", relative_mask, K)
    y = jnp.einsum("nca,dcnba->ndb", x, K)                           # [B, C_out, N]

    outs = [jnp.maximum(y[:, :m0], 0.0)]
    begin = m0
    for u in range(m1):
        cap = y[:, begin:begin + 3]
        begin += 3
        norm = jnp.sqrt(jnp.sum(cap * cap, axis=1, keepdims=True))
        factor = jnp.maximum(norm - bias[u], 0.0) / jnp.maximum(norm, 1e-10)
        outs.append(cap * factor)
    return jnp.concatenate(outs, axis=1)


if __name__ == "__main__":
    key = jax.random.PRNGKey(0)
    B, N = 2, 16
    repr_in = (4,)          # 4 scalar (l=0) inputs  -> C_in = 4
    repr_out = (2, 1)       # 2 scalar + 1 vector capsule -> C_out = 2 + 3 = 5
    radii = (0.5, 1.5, 2.5)
    sigma = 0.6
    c_in = repr_in[0]
    m0, m1 = repr_out[0], repr_out[1]
    n_rad = len(radii)

    kx, kp, kw0, kw1, kb = jax.random.split(key, 5)
    x = jax.random.normal(kx, (B, c_in, N), jnp.float32)
    pts = jax.random.uniform(kp, (B, N, 3), jnp.float32, minval=-1.5, maxval=1.5)
    # diff_M[n, :, b, a] = pts[n, a] - pts[n, b]  (antisymmetric by construction)
    diff_M = jnp.transpose(pts[:, None, :, :] - pts[:, :, None, :], (0, 3, 1, 2))
    dist = jnp.sqrt(jnp.sum(diff_M * diff_M, axis=1))
    relative_mask = (dist <= 2.0).astype(jnp.float32)

    params = {
        # per-(l_out,l_in,J) weights: [mult_out, mult_in, n_radii]
        "w0": jax.random.normal(kw0, (m0, c_in, n_rad), jnp.float32) / math.sqrt(c_in * n_rad),
        "w1": jax.random.normal(kw1, (m1, c_in, n_rad), jnp.float32) / math.sqrt(c_in * n_rad),
        # NormSoftplus bias per capsule with dim > 1, uniform in [bias_min, bias_max]
        "bias": jax.random.uniform(kb, (m1,), jnp.float32, minval=0.5, maxval=2.0),
    }

    y = point_norm_block_forward(x, diff_M, relative_mask, params,
                                 repr_in=repr_in, repr_out=repr_out,
                                 radii=radii, sigma=sigma)
    jax.block_until_ready(y)

    with jax.default_matmul_precision("highest"):
        y_ref = _reference_forward(x, diff_M, relative_mask, params,
                                   repr_out=repr_out, radii=radii, sigma=sigma)
    assert y.shape == (B, m0 + 3 * m1, N)
    # Tolerance accounts for the bf16 N^2 streams and bf16 MXU operands (f32 accumulation);
    # worst-case element error vs. the full-f32 reference is a few percent.
    assert jnp.allclose(y, y_ref, atol=3e-2, rtol=3e-2), float(jnp.max(jnp.abs(y - y_ref)))

    # mask-free kernel variant (no all-ones N^2 mask stream)
    y_nm = point_norm_block_forward(x, diff_M, None, params,
                                    repr_in=repr_in, repr_out=repr_out,
                                    radii=radii, sigma=sigma)
    jax.block_until_ready(y_nm)
    with jax.default_matmul_precision("highest"):
        y_nm_ref = _reference_forward(x, diff_M, None, params,
                                      repr_out=repr_out, radii=radii, sigma=sigma)
    assert jnp.allclose(y_nm, y_nm_ref, atol=3e-2, rtol=3e-2), \
        float(jnp.max(jnp.abs(y_nm - y_nm_ref)))

    print("KERNEL_OK")
</pallas_src>

<mosaic_0001>
module attributes {stable_mosaic.version = 11 : i64} {
  func.func @kernel(%arg0: i32, %arg1: i32, %arg2: memref<1x3x2x16xbf16, #tpu.memory_space<vmem>>, %arg3: memref<1x3x1x16xbf16, #tpu.memory_space<vmem>>, %arg4: memref<1x1xf32, #tpu.memory_space<vmem>>, %arg5: memref<1x3x16x16xbf16, #tpu.memory_space<vmem>>, %arg6: memref<1x16x16xbf16, #tpu.memory_space<vmem>>, %arg7: memref<1x5x16xf32, #tpu.memory_space<vmem>>) attributes {dimension_semantics = [#tpu.dimension_semantics<parallel>, #tpu.dimension_semantics<parallel>], iteration_bounds = array<i64: 2, 1>, scalar_prefetch = 0 : i64, scratch_operands = 0 : i64, tpu.core_type = #tpu.core_type<tc>, window_params = [{transform_indices = @transform_0, window_bounds = array<i64: 1, 3, 2, 16>}, {transform_indices = @transform_1, window_bounds = array<i64: 1, 3, 1, 16>}, {pipeline_mode = #tpu.pipeline_mode<synchronous>, transform_indices = @transform_2, window_bounds = array<i64: 1, 1>}, {transform_indices = @transform_3, window_bounds = array<i64: 1, 3, 16, 16>}, {transform_indices = @transform_4, window_bounds = array<i64: 1, 16, 16>}, {transform_indices = @transform_5, window_bounds = array<i64: 1, 5, 16>}]} {
    %c0 = arith.constant 0 : index
    %c0_0 = arith.constant 0 : index
    %c0_1 = arith.constant 0 : index
    %c0_2 = arith.constant 0 : index
    %0 = vector.load %arg5[%c0, %c0_0, %c0_1, %c0_2] : memref<1x3x16x16xbf16, #tpu.memory_space<vmem>>, vector<1x1x16x16xbf16>
    %1 = vector.shape_cast %0 : vector<1x1x16x16xbf16> to vector<16x16xbf16>
    %2 = arith.extf %1 : vector<16x16xbf16> to vector<16x16xf32>
    %c0_3 = arith.constant 0 : index
    %c1 = arith.constant 1 : index
    %c0_4 = arith.constant 0 : index
    %c0_5 = arith.constant 0 : index
    %3 = vector.load %arg5[%c0_3, %c1, %c0_4, %c0_5] : memref<1x3x16x16xbf16, #tpu.memory_space<vmem>>, vector<1x1x16x16xbf16>
    %4 = vector.shape_cast %3 : vector<1x1x16x16xbf16> to vector<16x16xbf16>
    %5 = arith.extf %4 : vector<16x16xbf16> to vector<16x16xf32>
    %c0_6 = arith.constant 0 : index
    %c2 = arith.constant 2 : index
    %c0_7 = arith.constant 0 : index
    %c0_8 = arith.constant 0 : index
    %6 = vector.load %arg5[%c0_6, %c2, %c0_7, %c0_8] : memref<1x3x16x16xbf16, #tpu.memory_space<vmem>>, vector<1x1x16x16xbf16>
    %7 = vector.shape_cast %6 : vector<1x1x16x16xbf16> to vector<16x16xbf16>
    %8 = arith.extf %7 : vector<16x16xbf16> to vector<16x16xf32>
    %9 = arith.mulf %2, %2 : vector<16x16xf32>
    %10 = arith.mulf %5, %5 : vector<16x16xf32>
    %11 = arith.addf %9, %10 : vector<16x16xf32>
    %12 = arith.mulf %8, %8 : vector<16x16xf32>
    %13 = arith.addf %11, %12 : vector<16x16xf32>
    %cst = arith.constant 1.000000e-16 : f32
    %14 = vector.broadcast %cst : f32 to vector<16x16xf32>
    %15 = arith.cmpf ogt, %13, %14 : vector<16x16xf32>
    %16 = math.rsqrt %13 : vector<16x16xf32>
    %cst_9 = arith.constant 0.000000e+00 : f32
    %17 = vector.broadcast %cst_9 : f32 to vector<16x16xf32>
    %18 = arith.select %15, %16, %17 : vector<16x16xi1>, vector<16x16xf32>
    %19 = arith.mulf %13, %18 : vector<16x16xf32>
    %20 = arith.mulf %5, %18 : vector<16x16xf32>
    %21 = arith.mulf %8, %18 : vector<16x16xf32>
    %22 = arith.mulf %2, %18 : vector<16x16xf32>
    %c0_10 = arith.constant 0 : index
    %c0_11 = arith.constant 0 : index
    %c0_12 = arith.constant 0 : index
    %23 = vector.load %arg6[%c0_10, %c0_11, %c0_12] : memref<1x16x16xbf16, #tpu.memory_space<vmem>>, vector<1x16x16xbf16>
    %24 = vector.shape_cast %23 : vector<1x16x16xbf16> to vector<16x16xbf16>
    %25 = arith.extf %24 : vector<16x16xbf16> to vector<16x16xf32>
    %cst_13 = arith.constant 7.900000e+00 : f32
    %26 = vector.broadcast %cst_13 : f32 to vector<16x16xf32>
    %27 = arith.minimumf %19, %26 : vector<16x16xf32>
    %cst_14 = arith.constant 5.000000e-01 : f32
    %28 = vector.broadcast %cst_14 : f32 to vector<16x16xf32>
    %29 = arith.subf %27, %28 : vector<16x16xf32>
    %30 = arith.mulf %29, %29 : vector<16x16xf32>
    %cst_15 = arith.constant -1.38888884 : f32
    %31 = vector.broadcast %cst_15 : f32 to vector<16x16xf32>
    %32 = arith.mulf %31, %30 : vector<16x16xf32>
    %33 = math.exp %32 : vector<16x16xf32>
    %34 = arith.mulf %33, %25 : vector<16x16xf32>
    %cst_16 = arith.constant 2.77777767 : f32
    %35 = vector.broadcast %cst_16 : f32 to vector<16x16xf32>
    %36 = arith.mulf %35, %29 : vector<16x16xf32>
    %37 = math.exp %36 : vector<16x16xf32>
    %38 = arith.truncf %34 : vector<16x16xf32> to vector<16x16xbf16>
    %c0_17 = arith.constant 0 : index
    %c0_18 = arith.constant 0 : index
    %c0_19 = arith.constant 0 : index
    %c0_20 = arith.constant 0 : index
    %39 = vector.load %arg2[%c0_17, %c0_18, %c0_19, %c0_20] : memref<1x3x2x16xbf16, #tpu.memory_space<vmem>>, vector<1x1x2x16xbf16>
    %40 = vector.shape_cast %39 : vector<1x1x2x16xbf16> to vector<2x16xbf16>
    %cst_21 = arith.constant dense<0.000000e+00> : vector<2x16xf32>
    %41 = tpu.matmul %40, %38, %cst_21 {dimension_numbers = #tpu.dot_dimension_numbers<[1], [0], [0], [1], [0, 0, 1, 1], [], []>} : vector<2x16xbf16>, vector<16x16xbf16>, vector<2x16xf32> -> vector<2x16xf32>
    %c0_22 = arith.constant 0 : index
    %c0_23 = arith.constant 0 : index
    %c0_24 = arith.constant 0 : index
    %c0_25 = arith.constant 0 : index
    %42 = vector.load %arg3[%c0_22, %c0_23, %c0_24, %c0_25] : memref<1x3x1x16xbf16, #tpu.memory_space<vmem>>, vector<1x1x1x16xbf16>
    %43 = vector.shape_cast %42 : vector<1x1x1x16xbf16> to vector<1x16xbf16>
    %44 = arith.mulf %34, %20 : vector<16x16xf32>
    %45 = arith.truncf %44 : vector<16x16xf32> to vector<16x16xbf16>
    %cst_26 = arith.constant dense<0.000000e+00> : vector<1x16xf32>
    %46 = tpu.matmul %43, %45, %cst_26 {dimension_numbers = #tpu.dot_dimension_numbers<[1], [0], [0], [1], [0, 0, 1, 1], [], []>} : vector<1x16xbf16>, vector<16x16xbf16>, vector<1x16xf32> -> vector<1x16xf32>
    %47 = arith.mulf %34, %21 : vector<16x16xf32>
    %48 = arith.truncf %47 : vector<16x16xf32> to vector<16x16xbf16>
    %cst_27 = arith.constant dense<0.000000e+00> : vector<1x16xf32>
    %49 = tpu.matmul %43, %48, %cst_27 {dimension_numbers = #tpu.dot_dimension_numbers<[1], [0], [0], [1], [0, 0, 1, 1], [], []>} : vector<1x16xbf16>, vector<16x16xbf16>, vector<1x16xf32> -> vector<1x16xf32>
    %50 = arith.mulf %34, %22 : vector<16x16xf32>
    %51 = arith.truncf %50 : vector<16x16xf32> to vector<16x16xbf16>
    %cst_28 = arith.constant dense<0.000000e+00> : vector<1x16xf32>
    %52 = tpu.matmul %43, %51, %cst_28 {dimension_numbers = #tpu.dot_dimension_numbers<[1], [0], [0], [1], [0, 0, 1, 1], [], []>} : vector<1x16xbf16>, vector<16x16xbf16>, vector<1x16xf32> -> vector<1x16xf32>
    %53 = arith.mulf %34, %37 : vector<16x16xf32>
    %54 = arith.truncf %53 : vector<16x16xf32> to vector<16x16xbf16>
    %c0_29 = arith.constant 0 : index
    %c1_30 = arith.constant 1 : index
    %c0_31 = arith.constant 0 : index
    %c0_32 = arith.constant 0 : index
    %55 = vector.load %arg2[%c0_29, %c1_30, %c0_31, %c0_32] : memref<1x3x2x16xbf16, #tpu.memory_space<vmem>>, vector<1x1x2x16xbf16>
    %56 = vector.shape_cast %55 : vector<1x1x2x16xbf16> to vector<2x16xbf16>
    %cst_33 = arith.constant dense<0.000000e+00> : vector<2x16xf32>
    %57 = tpu.matmul %56, %54, %cst_33 {dimension_numbers = #tpu.dot_dimension_numbers<[1], [0], [0], [1], [0, 0, 1, 1], [], []>} : vector<2x16xbf16>, vector<16x16xbf16>, vector<2x16xf32> -> vector<2x16xf32>
    %58 = arith.addf %41, %57 : vector<2x16xf32>
    %c0_34 = arith.constant 0 : index
    %c1_35 = arith.constant 1 : index
    %c0_36 = arith.constant 0 : index
    %c0_37 = arith.constant 0 : index
    %59 = vector.load %arg3[%c0_34, %c1_35, %c0_36, %c0_37] : memref<1x3x1x16xbf16, #tpu.memory_space<vmem>>, vector<1x1x1x16xbf16>
    %60 = vector.shape_cast %59 : vector<1x1x1x16xbf16> to vector<1x16xbf16>
    %61 = arith.mulf %53, %20 : vector<16x16xf32>
    %62 = arith.truncf %61 : vector<16x16xf32> to vector<16x16xbf16>
    %cst_38 = arith.constant dense<0.000000e+00> : vector<1x16xf32>
    %63 = tpu.matmul %60, %62, %cst_38 {dimension_numbers = #tpu.dot_dimension_numbers<[1], [0], [0], [1], [0, 0, 1, 1], [], []>} : vector<1x16xbf16>, vector<16x16xbf16>, vector<1x16xf32> -> vector<1x16xf32>
    %64 = arith.mulf %53, %21 : vector<16x16xf32>
    %65 = arith.truncf %64 : vector<16x16xf32> to vector<16x16xbf16>
    %cst_39 = arith.constant dense<0.000000e+00> : vector<1x16xf32>
    %66 = tpu.matmul %60, %65, %cst_39 {dimension_numbers = #tpu.dot_dimension_numbers<[1], [0], [0], [1], [0, 0, 1, 1], [], []>} : vector<1x16xbf16>, vector<16x16xbf16>, vector<1x16xf32> -> vector<1x16xf32>
    %67 = arith.mulf %53, %22 : vector<16x16xf32>
    %68 = arith.truncf %67 : vector<16x16xf32> to vector<16x16xbf16>
    %cst_40 = arith.constant dense<0.000000e+00> : vector<1x16xf32>
    %69 = tpu.matmul %60, %68, %cst_40 {dimension_numbers = #tpu.dot_dimension_numbers<[1], [0], [0], [1], [0, 0, 1, 1], [], []>} : vector<1x16xbf16>, vector<16x16xbf16>, vector<1x16xf32> -> vector<1x16xf32>
    %70 = arith.addf %46, %63 : vector<1x16xf32>
    %71 = arith.addf %49, %66 : vector<1x16xf32>
    %72 = arith.addf %52, %69 : vector<1x16xf32>
    %73 = arith.mulf %53, %37 : vector<16x16xf32>
    %74 = arith.truncf %73 : vector<16x16xf32> to vector<16x16xbf16>
    %c0_41 = arith.constant 0 : index
    %c2_42 = arith.constant 2 : index
    %c0_43 = arith.constant 0 : index
    %c0_44 = arith.constant 0 : index
    %75 = vector.load %arg2[%c0_41, %c2_42, %c0_43, %c0_44] : memref<1x3x2x16xbf16, #tpu.memory_space<vmem>>, vector<1x1x2x16xbf16>
    %76 = vector.shape_cast %75 : vector<1x1x2x16xbf16> to vector<2x16xbf16>
    %cst_45 = arith.constant dense<0.000000e+00> : vector<2x16xf32>
    %77 = tpu.matmul %76, %74, %cst_45 {dimension_numbers = #tpu.dot_dimension_numbers<[1], [0], [0], [1], [0, 0, 1, 1], [], []>} : vector<2x16xbf16>, vector<16x16xbf16>, vector<2x16xf32> -> vector<2x16xf32>
    %78 = arith.addf %58, %77 : vector<2x16xf32>
    %c0_46 = arith.constant 0 : index
    %c2_47 = arith.constant 2 : index
    %c0_48 = arith.constant 0 : index
    %c0_49 = arith.constant 0 : index
    %79 = vector.load %arg3[%c0_46, %c2_47, %c0_48, %c0_49] : memref<1x3x1x16xbf16, #tpu.memory_space<vmem>>, vector<1x1x1x16xbf16>
    %80 = vector.shape_cast %79 : vector<1x1x1x16xbf16> to vector<1x16xbf16>
    %81 = arith.mulf %73, %20 : vector<16x16xf32>
    %82 = arith.truncf %81 : vector<16x16xf32> to vector<16x16xbf16>
    %cst_50 = arith.constant dense<0.000000e+00> : vector<1x16xf32>
    %83 = tpu.matmul %80, %82, %cst_50 {dimension_numbers = #tpu.dot_dimension_numbers<[1], [0], [0], [1], [0, 0, 1, 1], [], []>} : vector<1x16xbf16>, vector<16x16xbf16>, vector<1x16xf32> -> vector<1x16xf32>
    %84 = arith.mulf %73, %21 : vector<16x16xf32>
    %85 = arith.truncf %84 : vector<16x16xf32> to vector<16x16xbf16>
    %cst_51 = arith.constant dense<0.000000e+00> : vector<1x16xf32>
    %86 = tpu.matmul %80, %85, %cst_51 {dimension_numbers = #tpu.dot_dimension_numbers<[1], [0], [0], [1], [0, 0, 1, 1], [], []>} : vector<1x16xbf16>, vector<16x16xbf16>, vector<1x16xf32> -> vector<1x16xf32>
    %87 = arith.mulf %73, %22 : vector<16x16xf32>
    %88 = arith.truncf %87 : vector<16x16xf32> to vector<16x16xbf16>
    %cst_52 = arith.constant dense<0.000000e+00> : vector<1x16xf32>
    %89 = tpu.matmul %80, %88, %cst_52 {dimension_numbers = #tpu.dot_dimension_numbers<[1], [0], [0], [1], [0, 0, 1, 1], [], []>} : vector<1x16xbf16>, vector<16x16xbf16>, vector<1x16xf32> -> vector<1x16xf32>
    %90 = arith.addf %70, %83 : vector<1x16xf32>
    %91 = arith.addf %71, %86 : vector<1x16xf32>
    %92 = arith.addf %72, %89 : vector<1x16xf32>
    %cst_53 = arith.constant 0.000000e+00 : f32
    %93 = vector.broadcast %cst_53 : f32 to vector<2x16xf32>
    %94 = arith.maximumf %78, %93 : vector<2x16xf32>
    %95 = arith.mulf %90, %90 : vector<1x16xf32>
    %96 = arith.mulf %91, %91 : vector<1x16xf32>
    %97 = arith.addf %95, %96 : vector<1x16xf32>
    %98 = arith.mulf %92, %92 : vector<1x16xf32>
    %99 = arith.addf %97, %98 : vector<1x16xf32>
    %cst_54 = arith.constant 0.000000e+00 : f32
    %100 = vector.broadcast %cst_54 : f32 to vector<1x16xf32>
    %101 = arith.cmpf ogt, %99, %100 : vector<1x16xf32>
    %102 = math.rsqrt %99 : vector<1x16xf32>
    %cst_55 = arith.constant 0.000000e+00 : f32
    %103 = vector.broadcast %cst_55 : f32 to vector<1x16xf32>
    %104 = arith.select %101, %102, %103 : vector<1x16xi1>, vector<1x16xf32>
    %105 = arith.mulf %99, %104 : vector<1x16xf32>
    %c0_56 = arith.constant 0 : index
    %c0_57 = arith.constant 0 : index
    %106 = vector.load %arg4[%c0_56, %c0_57] : memref<1x1xf32, #tpu.memory_space<vmem>>, vector<1x1xf32>
    %107 = vector.broadcast %106 : vector<1x1xf32> to vector<1x16xf32>
    %108 = arith.subf %105, %107 : vector<1x16xf32>
    %cst_58 = arith.constant 0.000000e+00 : f32
    %109 = vector.broadcast %cst_58 : f32 to vector<1x16xf32>
    %110 = arith.maximumf %108, %109 : vector<1x16xf32>
    %111 = arith.mulf %110, %104 : vector<1x16xf32>
    %112 = arith.mulf %90, %111 : vector<1x16xf32>
    %113 = arith.mulf %91, %111 : vector<1x16xf32>
    %114 = arith.mulf %92, %111 : vector<1x16xf32>
    %115 = vector.shape_cast %112 : vector<1x16xf32> to vector<1x1x16xf32>
    %116 = vector.shape_cast %113 : vector<1x16xf32> to vector<1x1x16xf32>
    %117 = vector.shape_cast %114 : vector<1x16xf32> to vector<1x1x16xf32>
    %118 = tpu.concatenate %115, %116, %117 in 1 : vector<1x1x16xf32>, vector<1x1x16xf32>, vector<1x1x16xf32> -> vector<1x3x16xf32>
    %119 = vector.shape_cast %118 : vector<1x3x16xf32> to vector<3x16xf32>
    %120 = tpu.concatenate %94, %119 in 0 : vector<2x16xf32>, vector<3x16xf32> -> vector<5x16xf32>
    %c0_59 = arith.constant 0 : index
    %c0_60 = arith.constant 0 : index
    %c0_61 = arith.constant 0 : index
    %121 = vector.load %arg7[%c0_59, %c0_60, %c0_61] : memref<1x5x16xf32, #tpu.memory_space<vmem>>, vector<1x5x16xf32>
    %122 = vector.shape_cast %121 : vector<1x5x16xf32> to vector<5x16xf32>
    %123 = vector.shape_cast %120 : vector<5x16xf32> to vector<1x5x16xf32>
    tpu.vector_store %arg7[%c0_59, %c0_60, %c0_61], %123 {strides = array<i32>} : memref<1x5x16xf32, #tpu.memory_space<vmem>>, vector<1x5x16xf32>,
    return
  }
  func.func @transform_0(%arg0: i32, %arg1: i32) -> (i32, i32, i32, i32) {
    %c0_i32 = arith.constant 0 : i32
    %c0_i32_0 = arith.constant 0 : i32
    %c0_i32_1 = arith.constant 0 : i32
    %c0_i32_2 = arith.constant 0 : i32
    return %arg0, %c0_i32, %c0_i32_0, %c0_i32_1 : i32, i32, i32, i32
  }
  func.func @transform_1(%arg0: i32, %arg1: i32) -> (i32, i32, i32, i32) {
    %c0_i32 = arith.constant 0 : i32
    %c0_i32_0 = arith.constant 0 : i32
    %c0_i32_1 = arith.constant 0 : i32
    %c0_i32_2 = arith.constant 0 : i32
    return %arg0, %c0_i32, %c0_i32_0, %c0_i32_1 : i32, i32, i32, i32
  }
  func.func @transform_2(%arg0: i32, %arg1: i32) -> (i32, i32) {
    %c0_i32 = arith.constant 0 : i32
    %c0_i32_0 = arith.constant 0 : i32
    %c0_i32_1 = arith.constant 0 : i32
    return %c0_i32, %c0_i32_0 : i32, i32
  }
  func.func @transform_3(%arg0: i32, %arg1: i32) -> (i32, i32, i32, i32) {
    %c0_i32 = arith.constant 0 : i32
    %c0_i32_0 = arith.constant 0 : i32
    %c0_i32_1 = arith.constant 0 : i32
    return %arg0, %c0_i32, %c0_i32_0, %arg1 : i32, i32, i32, i32
  }
  func.func @transform_4(%arg0: i32, %arg1: i32) -> (i32, i32, i32) {
    %c0_i32 = arith.constant 0 : i32
    %c0_i32_0 = arith.constant 0 : i32
    return %arg0, %c0_i32, %arg1 : i32, i32, i32
  }
  func.func @transform_5(%arg0: i32, %arg1: i32) -> (i32, i32, i32) {
    %c0_i32 = arith.constant 0 : i32
    %c0_i32_0 = arith.constant 0 : i32
    return %arg0, %c0_i32, %arg1 : i32, i32, i32
  }
}

</mosaic_0001>

<bundles_post_ra>
// kernel: tpu_custom_call.1
= control target key start
LH: loop header
LB: loop body
LE: loop exit
PB: predicated region body
PF: predicated region fallthrough
CT: control target
= control target key end

     0   :  { %s1705_s0 = inlined_call_operand.vmem [shape: bf16[2,3,2,16], index: 0, kind: input, shape index: {}]   ;;  %s1706_s1 = inlined_call_operand.vmem [shape: bf16[2,3,1,16], index: 1, kind: input, shape index: {}]   ;;  %s1707_s2 = inlined_call_operand.<no memory space> [shape: f32[1,1], index: 2, kind: input, shape index: {}]   ;;  %s1708_s3 = inlined_call_operand.hbm [shape: bf16[2,3,16,16], index: 3, kind: input, shape index: {}]   ;;  %s1709_s4 = inlined_call_operand.vmem [shape: bf16[2,16,16], index: 4, kind: input, shape index: {}]   ;;  %s1710_s5 = inlined_call_operand.vmem [shape: f32[2,5,16], index: 5, kind: output, shape index: {}]  }
   0x1   :  { %v10_v0 = vstv %s1707_s2 }
   0x2   :  { %11 = vst [vmem:[#allocation2] sm:$0x1] %v10_v0 }
   0x3   :  { %12 = vsyncpa [#allocation4], 0 }
   0x4   :  { %14 = vsyncpa [#allocation4 + $0x1], 0  ;;  %s1492_s20 = smov 0   ;;  %s1494_s21 = smov 0  }
   0x5   :  { %s1496_s22 = smov 0   ;;  %s1498_s23 = smov 0  }
   0x6   :  { %s1500_s24 = smov 0   ;;  %s1502_s25 = smov 0  }
   0x7 LB: > { %s1112_s2 = sadd.s32 4294967295, %s1451_s25   ;;  %s32_s26 = sadd.s32 1, %s1447_s24  ;;  %s1451_s25 = sphi %s1502_s25, %s20_s25   ;;  %s1447_s24 = sphi %s1500_s24, %s1717_s24   ;;  %s1443_s23 = sphi %s1498_s23, %s1716_s23   ;;  %s1439_s22 = sphi %s1496_s22, %s1715_s22   ;;  %s1435_s21 = sphi %s1494_s21, %s1714_s21   ;;  %s1431_s20 = sphi %s1492_s20, %s1713_s20  }
   0x8   : > { %p34_p0 = scmp.ge.s32.totalorder %s32_s26, 2  ;;  %s114_s27 = sadd.s32 1, %s1439_s22 }
   0x9   : > { %p121_p1 = scmp.ne.s32.totalorder %s1439_s22, %s1435_s21  ;;  %p122_p2 = scmp.eq.s32.totalorder %s1451_s25, 0 }
   0xa   : > { %s1719_s26 = smov (%p34_p0, %s32_s26), 0  ;;  %p127_p4 = scmp.ne.s32.totalorder %s1435_s21, %s1431_s20 }
   0xb   : > { %p123_p3 = por %p122_p2, %p121_p1  ;;  %s109_s28 = ssub.s32 %s1447_s24, %s1719_s26 }
   0xc   : > { %p128_p5 = scmp.eq.s32.totalorder %s1112_s2, 0  ;;  %p112_p6 = scmp.eq.s32.totalorder %s109_s28, 0 }
   0xd   : > { %p1302_p8 = scmp.lt.s32.totalorder %s1451_s25, 2  ;;  %s224_s6 = sand.u32 1, %s1439_s22  }
   0xe   : > { %p1531_p7 = por %p128_p5, %p127_p4  ;;  %s1293_s7 = smul.u32 384, %s1447_s24 }
   0xf   : > { %s1537_s30 = scalar_select %p112_p6, %s1439_s22, %s114_s27  }
  0x10   : > { %s1292_s8 = smul.u32 24, %s224_s6  ;;  %s1544_s11 = scalar_lea.hbm %s1708_s3, %s1293_s7 }
  0x11   : > { %p1546_p9 = pnand %p1302_p8, %p123_p3  ;;  %s1552_s15 = scalar_lea.sflag [#allocation4], %s224_s6 }
  0x12   : > { %s228_s13 = scalar_lea.vmem [#allocation3], %s1292_s8  ;;  %s1371_s16 = scalar_lea.hbm %s1544_s11, 384 }
  0x13   : > { %s236_s14 = sshll.u32 %s228_s13, 4  ;;  %p1372_p10 = scmp.ne.s32.totalorder %s1544_s11, %s1371_s16  ;;  %s1550_s14 = int_to_ptr.vmem [resolvable:$true] %s236_s14 }
  0x14   : > { %p1373_p11 = pneg %p1546_p9  ;;  %s1376_s19 = scalar_lea.hbm %s1708_s3, 768 }
  0x15   : > { %p1377_p0 = scmp.lt.u32.totalorder %s1544_s11, %s1708_s3  ;;  %p1378_p1 = scmp.lt.u32.totalorder %s1376_s19, %s1371_s16 }
  0x16   : > { %p1374_p12 = pnand %p1373_p11, %p1372_p10  ;;  %p1380_p3 = scmp.lt.u32.totalorder %s1371_s16, %s1544_s11 }
  0x17   : > { %p1379_p2 = por %p1378_p1, %p1377_p0 }
  0x18   : > { %p1375_p13 = pneg %p1374_p12 }
  0x19   : > { %p1381_p4 = por %p1380_p3, %p1379_p2 }
  0x1b   : > { %p1382_p5 = pnand %p1381_p4, %p1375_p13 }
  0x1d   : > { %1385 = shalt.err (!%p1382_p5)
}
  0x1e   : > { %s1386_s27 = scalar_lea.vmem %s1550_s14, 384  ;;  %s1453_s28 = smov [#allocation3]  }
  0x1f   : > { %p1387_p6 = scmp.ne.s32.totalorder %s1550_s14, %s1386_s27  ;;  %s1391_s6 = sshll.u32 %s1453_s28, 4  ;;  %s1392_s6 = int_to_ptr.vmem [resolvable:$false] %s1391_s6 }
  0x20   : > { %s1393_s7 = scalar_lea.vmem %s1392_s6, 768  ;;  %p1394_p12 = scmp.lt.s32.totalorder %s1550_s14, %s1392_s6 }
  0x21   : > { %p1389_p8 = pnand %p1387_p6, %p1373_p11  ;;  %p1395_p0 = scmp.lt.s32.totalorder %s1393_s7, %s1386_s27 }
  0x23   : > { %p1390_p10 = pneg %p1389_p8  ;;  %p1396_p1 = por %p1395_p0, %p1394_p12 }
  0x25   : > { %p1397_p2 = pnand %p1396_p1, %p1390_p10 }
  0x27   : > { %1400 = shalt.err (!%p1397_p2)
}
  0x28   : > { %s1454_s8 = smov 64   ;;  %s1455_s9 = smov 4  }
  0x29   : > { %1301 = dma.hbm_to_vmem [thread:$0]  (!%p1546_p9), %s1544_s11, 384, %s1550_s14, %s1552_s15, %s1454_s8, %s1454_s8, %s1455_s9  }
  0x2a   : > { %p1117_p11 = scmp.ge.s32.totalorder %s1451_s25, 1  ;;  %p255_p13 = scmp.lt.s32.totalorder %s1451_s25, 3 }
  0x2c   : > { %p256_p3 = pnand %p1117_p11, %p255_p13 }
  0x2d   : > { %s261_s10 = sand.u32 (!%p256_p3), 1, %s1435_s21  }
  0x2e   : > { %259 = sbr.rel (%p256_p3) target bundleno = 402 (0x192), region = 40  ;;  %s262_s16 = scalar_lea.sflag (!%p256_p3), [#allocation4], %s261_s10 }
  0x2f   : > { %s1294_s13 = smul.u32 (!%p256_p3), 24, %s261_s10 }
  0x31   : > { %s265_s17 = scalar_lea.vmem (!%p256_p3), [#allocation3], %s1294_s13 }
  0x35   : > { %1426 = dma.done.wait (%p1531_p7), %s262_s16, 384  }
  0x36   : > { %1428 = vsyncadd (%p1531_p7), %s262_s16, 4294966912  ;;  %v1456_v1 = vmov 0.0   ;;  %vm1457_vm0 = vmmov 0   ;;  %v1458_v2 = vmov 0   ;;  %v1147_v3 = vld [vmem:[%s265_s17] sm:$0xff]   ;;  %v1162_v4 = vld [vmem:[%s265_s17 + $0x8] sm:$0xff]  }
  0x37   : > { %1188 = vmatprep.subr.bf16.mxu0 %v1456_v1  ;;  %1200 = vmatprep.subr.bf16.mxu1 %v1456_v1  ;;  %v1163_v5 = vld [vmem:[%s265_s17 + $0x10] sm:$0xff]   ;;  %v1593_v6 = vunpack.c.l.bf16 %v1147_v3  ;;  %v1595_v7 = vunpack.c.h.bf16 %v1147_v3  ;;  %v1152_v8 = vunpack.c.l.bf16 %v1162_v4  ;;  %v1153_v9 = vunpack.c.h.bf16 %v1162_v4  ;;  %v953_v16 = vld [vmem:[#allocation2] sm:$0x1]  ;;  %p310_p7 = scmp.lt.s32.totalorder %s1443_s23, 1 }
  0x38   : > { %1190 = vmatprep.mubr.msk.bf16.mxu0 %vm1457_vm0, %v1456_v1  ;;  %1202 = vmatprep.mubr.msk.bf16.mxu1 %vm1457_vm0, %v1456_v1  ;;  %v1156_v10 = vunpack.c.l.bf16 %v1163_v5  ;;  %v1157_v11 = vunpack.c.h.bf16 %v1163_v5  ;;  %vm413_vm3 = vcmask 130048   ;;  %vm975_vm5 = vcmask 1040384  }
  0x39   : > { %1356 = vset.pattern.permute.xlu0 %v1458_v2  ;;  %v348_v12 = vmul.f32 %v1593_v6, %v1593_v6  ;;  %v349_v13 = vmul.f32 %v1595_v7, %v1595_v7  ;;  %v350_v14 = vmul.f32 %v1152_v8, %v1152_v8  ;;  %v351_v15 = vmul.f32 %v1153_v9, %v1153_v9  ;;  %s1721_s23 = smov (!%p310_p7, %s1443_s23), 1 }
  0x3a   : > { %v354_v17 = vmul.f32 %v1156_v10, %v1156_v10  ;;  %v355_v18 = vmul.f32 %v1157_v11, %v1157_v11  ;;  %956 = vperm.xlu0 %1356, %v953_v16   ;;  %s1145_s29 = sshll.u32 %s1721_s23, 3  ;;  %s1295_s15 = smul.u32 3, %s1721_s23  ;;  %vm977_vm6 = vcmask 1041408   ;;  %vm983_vm7 = vcmask 126976  }
  0x3b   : > { %v352_v19 = vadd.f32 %v350_v14, %v348_v12  ;;  %v353_v20 = vadd.f32 %v351_v15, %v349_v13  ;;  %s325_s14 = scalar_lea.vmem %s1709_s4, %s1145_s29  ;;  %s332_s8 = scalar_lea.vmem %s1710_s5, %s1145_s29 }
  0x3c   : > { %v1159_v43 = vld [vmem:[%s325_s14] sm:$0xff]   ;;  %s1619_s20 = scalar_lea.vmem %s1705_s0, %s1295_s15  ;;  %s1626_s28 = scalar_lea.vmem %s1706_s1, %s1295_s15 }
  0x3d   : > { %v356_v21 = vadd.f32 %v354_v17, %v352_v19  ;;  %v357_v22 = vadd.f32 %v355_v18, %v353_v20  ;;  %v1160_v44 = vunpack.c.l.bf16 %v1159_v43  ;;  %v1161_v46 = vunpack.c.h.bf16 %v1159_v43  ;;  %v1127_v0 = vld [vmem:[%s1619_s20 + $0x1] sm:$0x1]  ;;  %v397_v14 = vld [vmem:[%s1619_s20] sm:$0x1] }
  0x3e   : > { %v1130_v3 = vld [vmem:[%s1626_s28 + $0x1] sm:$0x1]  ;;  %v398_v18 = vld [vmem:[%s1626_s28] sm:$0x1] }
  0x3f   : > { %1357 = vrsqrt.f32 %v356_v21  ;;  %vm358_vm1 = vcmp.gt.f32.partialorder %v356_v21, 1e-16  ;;  %vm359_vm2 = vcmp.gt.f32.partialorder %v357_v22, 1e-16 }
  0x40   : > { %1359 = vrsqrt.f32 %v357_v22 }
  0x49   : > { %v1358_v23 = vpop.eup %1357 }
  0x4a   : > { %v1360_v24 = vpop.eup %1359  ;;  %v362_v25 = vsel %vm358_vm1, %v1358_v23, 0.0 }
  0x4b   : > { %v363_v26 = vsel %vm359_vm2, %v1360_v24, 0.0  ;;  %v364_v27 = vmul.f32 %v362_v25, %v356_v21  ;;  %v366_v51 = vmul.f32 %v1152_v8, %v362_v25  ;;  %v1612_v54 = vmul.f32 %v1156_v10, %v362_v25 }
  0x4c   : > { %v365_v28 = vmul.f32 %v363_v26, %v357_v22  ;;  %v367_v53 = vmul.f32 %v1153_v9, %v363_v26  ;;  %v1614_v55 = vmul.f32 %v1157_v11, %v363_v26  ;;  %v370_v5 = vmul.f32 %v1593_v6, %v362_v25 }
  0x4d   : > { %v376_v29 = vmin.f32 %v364_v27, 7.9  ;;  %v371_v8 = vmul.f32 %v1595_v7, %v363_v26 }
  0x4e   : > { %v377_v30 = vmin.f32 %v365_v28, 7.9 }
  0x4f   : > { %v1125_v31 = vadd.f32 -0.5, %v376_v29  ;;  %v1139_v29 = vld [vmem:[%s1626_s28 + $0x2] sm:$0x1] }
  0x50   : > { %v1126_v32 = vadd.f32 -0.5, %v377_v30 }
  0x51   : > { %v380_v33 = vmul.f32 %v1125_v31, %v1125_v31  ;;  %v390_v34 = vmul.f32 2.7777777, %v1125_v31 }
  0x52   : > { %v381_v35 = vmul.f32 %v1126_v32, %v1126_v32  ;;  %v391_v36 = vmul.f32 2.7777777, %v1126_v32 }
  0x53   : > { %v382_v37 = vmul.f32 -1.3888888, %v380_v33  ;;  %v392_v38 = vmul.f32 1.442695, %v390_v34  ;;  %v1137_v33 = vld [vmem:[%s1619_s20 + $0x2] sm:$0x1] }
  0x54   : > { %v383_v39 = vmul.f32 -1.3888888, %v381_v35  ;;  %v394_v40 = vmul.f32 1.442695, %v391_v36 }
  0x55   : > { %v384_v41 = vmul.f32 1.442695, %v382_v37  ;;  %1361 = vpow2.f32 %v392_v38 }
  0x56   : > { %v386_v42 = vmul.f32 1.442695, %v383_v39  ;;  %1363 = vpow2.f32 %v394_v40 }
  0x57   : > { %1365 = vpow2.f32 %v384_v41 }
  0x58   : > { %1367 = vpow2.f32 %v386_v42 }
  0x5f   : > { %v1362_v45 = vpop.eup %1361 }
  0x60   : > { %v1364_v47 = vpop.eup %1363 }
  0x61   : > { %v1366_v48 = vpop.eup %1365 }
  0x62   : > { %v1368_v49 = vpop.eup %1367  ;;  %v388_v50 = vmul.f32 %v1366_v48, %v1160_v44 }
  0x63   : > { %v389_v52 = vmul.f32 %v1368_v49, %v1161_v46 }
  0x64   : > { %v408_v56 = vmul.f32 %v1362_v45, %v388_v50  ;;  %v399_v9 = vmul.f32 %v388_v50, %v366_v51  ;;  %v402_v7 = vmul.f32 %v388_v50, %v1612_v54  ;;  %v405_v16 = vmul.f32 %v388_v50, %v370_v5 }
  0x65   : > { %v409_v57 = vmul.f32 %v1364_v47, %v389_v52  ;;  %v396_v2 = vpack.c.bf16 %v389_v52, %v388_v50  ;;  %v400_v10 = vmul.f32 %v389_v52, %v367_v53  ;;  %v403_v15 = vmul.f32 %v389_v52, %v1614_v55 }
  0x66   : > { %v502_v58 = vmul.f32 %v408_v56, %v366_v51  ;;  %v548_v61 = vmul.f32 %v408_v56, %v1612_v54  ;;  %v591_v11 = vmul.f32 %v408_v56, %v370_v5  ;;  %v406_v17 = vmul.f32 %v389_v52, %v371_v8 }
  0x67   : > { %v410_v59 = vpack.c.bf16 %v409_v57, %v408_v56  ;;  %v503_v60 = vmul.f32 %v409_v57, %v367_v53  ;;  %v549_v62 = vmul.f32 %v409_v57, %v1614_v55  ;;  %v592_v12 = vmul.f32 %v409_v57, %v371_v8 }
  0x68   : > { %v401_v13 = vpack.c.bf16 %v400_v10, %v399_v9  ;;  %v404_v19 = vpack.c.bf16 %v403_v15, %v402_v7  ;;  %v757_v20 = vmul.f32 %v1362_v45, %v408_v56  ;;  %v758_v21 = vmul.f32 %v1364_v47, %v409_v57 }
  0x69   : > { %1189 = vmatpush3.bf16.msra.mxu0 %v410_v59  ;;  %v504_v63 = vpack.c.bf16 %v503_v60, %v502_v58  ;;  %v550_v4 = vpack.c.bf16 %v549_v62, %v548_v61  ;;  %v593_v6 = vpack.c.bf16 %v592_v12, %v591_v11  ;;  %v407_v22 = vpack.c.bf16 %v406_v17, %v405_v16 }
  0x6a   : > { %1194 = vmatprep.subr.bf16.mxu0 %v1456_v1  ;;  %v808_v23 = vmul.f32 %v757_v20, %v366_v51  ;;  %v809_v24 = vmul.f32 %v758_v21, %v367_v53  ;;  %v854_v26 = vmul.f32 %v757_v20, %v1612_v54  ;;  %v855_v27 = vmul.f32 %v758_v21, %v1614_v55 }
  0x6b   : > { %1201 = vmatpush3.bf16.msra.mxu1 %v504_v63  ;;  %v759_v28 = vpack.c.bf16 %v758_v21, %v757_v20  ;;  %v897_v31 = vmul.f32 %v757_v20, %v370_v5  ;;  %v898_v32 = vmul.f32 %v758_v21, %v371_v8  ;;  %v959_v55 = vlaneseq }
  0x6c   : > { %1191 = vmatmul.mubr.msk.bf16.vlgmr.msra.gmra.mrb[0].mxu0 %vm413_vm3, %v1127_v0  ;;  %1206 = vmatprep.subr.bf16.mxu1 %v1456_v1  ;;  %v810_v25 = vpack.c.bf16 %v809_v24, %v808_v23  ;;  %v856_v30 = vpack.c.bf16 %v855_v27, %v854_v26 }
  0x6d   : > { %1195 = vmatpush3.bf16.msra.mxu0 %v396_v2  ;;  %1196 = vmatprep.mubr.msk.bf16.mxu0 %vm1457_vm0, %v1456_v1  ;;  %v899_v34 = vpack.c.bf16 %v898_v32, %v897_v31  ;;  %v960_v56 = vshrl.u32 %v959_v55, 7 }
  0x6e   : > { %1203 = vmatmul.mubr.msk.bf16.vlgmr.msra.gmra.mrb[0].mxu1 %vm413_vm3, %v1130_v3  ;;  %1212 = vmatprep.subr.bf16.mxu0 %v1456_v1 }
  0x6f   : > { %1207 = vmatpush3.bf16.msra.mxu1 %v550_v4  ;;  %1208 = vmatprep.mubr.msk.bf16.mxu1 %vm1457_vm0, %v1456_v1  ;;  %v961_v57 = vsub.s32 0, %v960_v56 }
  0x70   : > { %1218 = vmatprep.subr.bf16.mxu1 %v1456_v1 }
  0x76   : > { %1209 = vmatmul.mubr.msk.bf16.vlgmr.msra.gmra.mrb[4].mxu1 %vm413_vm3, %v1130_v3 }
  0x77   : > { %1219 = vmatpush3.bf16.msra.mxu1 %v401_v13  ;;  %1220 = vmatprep.mubr.msk.bf16.mxu1 %vm1457_vm0, %v1456_v1 }
  0x78   : > { %1197 = vmatmul.mubr.msk.bf16.vlgmr.msra.gmra.mrb[0].mxu0 %vm413_vm3, %v397_v14  ;;  %1224 = vmatprep.subr.bf16.mxu1 %v1456_v1 }
  0x79   : > { %1213 = vmatpush3.bf16.msra.mxu0 %v593_v6  ;;  %1214 = vmatprep.mubr.msk.bf16.mxu0 %vm1457_vm0, %v1456_v1 }
  0x7a   : > { %1230 = vmatprep.subr.bf16.mxu0 %v1456_v1 }
  0x7e   : > { %1221 = vmatmul.mubr.msk.bf16.vlgmr.msra.gmra.mrb[0].mxu1 %vm413_vm3, %v398_v18 }
  0x7f   : > { %1225 = vmatpush3.bf16.msra.mxu1 %v404_v19  ;;  %1226 = vmatprep.mubr.msk.bf16.mxu1 %vm1457_vm0, %v1456_v1 }
  0x80   : > { %1215 = vmatmul.mubr.msk.bf16.vlgmr.msra.gmra.mrb[4].mxu0 %vm413_vm3, %v1130_v3  ;;  %1242 = vmatprep.subr.bf16.mxu1 %v1456_v1 }
  0x81   : > { %1231 = vmatpush3.bf16.msra.mxu0 %v407_v22  ;;  %1232 = vmatprep.mubr.msk.bf16.mxu0 %vm1457_vm0, %v1456_v1 }
  0x82   : > { %1236 = vmatprep.subr.bf16.mxu0 %v1456_v1 }
  0x86   : > { %1227 = vmatmul.mubr.msk.bf16.vlgmr.msra.gmra.mrb[4].mxu1 %vm413_vm3, %v398_v18 }
  0x87   : > { %1243 = vmatpush3.bf16.msra.mxu1 %v810_v25  ;;  %1244 = vmatprep.mubr.msk.bf16.mxu1 %vm1457_vm0, %v1456_v1 }
  0x88   : > { %1248 = vmatprep.subr.bf16.mxu1 %v1456_v1 }
  0x8c   : > { %1233 = vmatmul.mubr.msk.bf16.vlgmr.msra.gmra.mrb[4].mxu0 %vm413_vm3, %v398_v18 }
  0x8d   : > { %1237 = vmatpush3.bf16.msra.mxu0 %v759_v28  ;;  %1238 = vmatprep.mubr.msk.bf16.mxu0 %vm1457_vm0, %v1456_v1 }
  0x8e   : > { %1245 = vmatmul.mubr.msk.bf16.vlgmr.msra.gmra.mrb[0].mxu1 %vm413_vm3, %v1139_v29  ;;  %1254 = vmatprep.subr.bf16.mxu0 %v1456_v1 }
  0x8f   : > { %1249 = vmatpush3.bf16.msra.mxu1 %v856_v30  ;;  %1250 = vmatprep.mubr.msk.bf16.mxu1 %vm1457_vm0, %v1456_v1 }
  0x94   : > { %1239 = vmatmul.mubr.msk.bf16.vlgmr.msra.gmra.mrb[0].mxu0 %vm413_vm3, %v1137_v33 }
  0x95   : > { %1255 = vmatpush3.bf16.msra.mxu0 %v899_v34  ;;  %1256 = vmatprep.mubr.msk.bf16.mxu0 %vm1457_vm0, %v1456_v1 }
  0x96   : > { %1251 = vmatmul.mubr.msk.bf16.vlgmr.msra.gmra.mrb[4].mxu1 %vm413_vm3, %v1139_v29 }
  0x9c   : > { %1257 = vmatmul.mubr.msk.bf16.vlgmr.msra.gmra.mrb[4].mxu0 %vm413_vm3, %v1139_v29 }
  0xb9   : > { %v957_v58 = vpop.permute.xlu0 %956 }
  0xba   : > { %v962_v60 = vrot.slane %v957_v58, %v961_v57 }
 0x161   : > { %v848_v35 = vpop.f32.mrb[0].mxu1 }
 0x162   : > { %v1246_v36 = vpop.f32.mrb[1].mxu1  ;;  %v944_v43 = vmul.f32 %v848_v35, %v848_v35 }
 0x163   : > { %v851_v37 = vpop.f32.mrb[2].mxu1 }
 0x164   : > { %v1247_v38 = vpop.f32.mrb[3].mxu1 }
 0x167   : > { %v799_v39 = vpop.f32.mrb[0].mxu0 }
 0x168   : > { %v1240_v40 = vpop.f32.mrb[1].mxu0  ;;  %v943_v12 = vmax.f32 %v799_v39, 0.0 }
 0x169   : > { %v802_v41 = vpop.f32.mrb[2].mxu0  ;;  %v891_v42 = vpop.f32.mrb[4].mxu1 }
 0x16a   : > { %v945_v44 = vmul.f32 %v891_v42, %v891_v42  ;;  %v1241_v45 = vpop.f32.mrb[3].mxu0  ;;  %v1252_v46 = vpop.f32.mrb[5].mxu1 }
 0x16b   : > { %v894_v47 = vpop.f32.mrb[6].mxu1 }
 0x16c   : > { %v946_v48 = vadd.f32 %v945_v44, %v944_v43  ;;  %v1253_v49 = vpop.f32.mrb[7].mxu1 }
 0x16f   : > { %v934_v1 = vpop.f32.mrb[4].mxu0 }
 0x170   : > { %v947_v50 = vmul.f32 %v934_v1, %v934_v1  ;;  %v1258_v51 = vpop.f32.mrb[5].mxu0 }
 0x171   : > { %v937_v52 = vpop.f32.mrb[6].mxu0 }
 0x172   : > { %v948_v53 = vadd.f32 %v947_v50, %v946_v48  ;;  %v1259_v54 = vpop.f32.mrb[7].mxu0 }
 0x174   : > { %1369 = vrsqrt.f32 %v948_v53  ;;  %vm949_vm4 = vcmp.gt.f32.partialorder %v948_v53, 0.0 }
 0x17e   : > { %v1370_v59 = vpop.eup %1369 }
 0x17f   : > { %v951_v61 = vsel %vm949_vm4, %v1370_v59, 0.0 }
 0x180   : > { %v952_v62 = vmul.f32 %v951_v61, %v948_v53 }
 0x182   : > { %v963_v63 = vsub.f32 %v952_v62, %v962_v60 }
 0x184   : > { %v964_v0 = vmax.f32 %v963_v63, 0.0 }
 0x186   : > { %v965_v2 = vmul.f32 %v964_v0, %v951_v61 }
 0x188   : > { %v966_v3 = vmul.f32 %v965_v2, %v848_v35  ;;  %v967_v4 = vmul.f32 %v965_v2, %v891_v42  ;;  %v968_v5 = vmul.f32 %v965_v2, %v934_v1 }
 0x18a   : > { %v970_v8 = vrot.slane %v967_v4, 7  ;;  %v973_v9 = vrot.slane %v968_v5, 6 }
 0x18c   : > { %v976_v10 = vsel %vm975_vm5, %v966_v3, %v970_v8 }
 0x18d   : > { %v978_v11 = vsel %vm977_vm6, %v976_v10, %v973_v9 }
 0x18e   : > { %v980_v13 = vrot.slane %v978_v11, 6 }
 0x190   : > { %v982_v14 = vsel %vm977_vm6, %v943_v12, %v980_v13 }
 0x191   : > { %984 = vst.msk [vmem:[%s332_s8] sm:$0x1f] %vm983_vm7, %v982_v14 }
 0x192 PF: > { %s20_s25 = sadd.s32 1, %s1451_s25   ;;  %s1713_s20 = smov %s1435_s21 }
 0x193   : > { %p17_p9 = scmp.ge.s32.totalorder %s20_s25, 4   ;;  %s1714_s21 = smov %s1439_s22 }
 0x194   : > { %s1715_s22 = smov %s1537_s30  ;;  %s1716_s23 = smov %s1447_s24 }
 0x195   : > { %s1717_s24 = smov %s1719_s26  ;;  %19 = sbr.rel (!%p17_p9) target bundleno = 7 (0x7), region = 95 }
 0x19c   :  { %1010 = vsyncpa [#allocation4], 1 }
 0x19d   :  { %1012 = vsyncpa [#allocation4 + $0x1], 1 }

</bundles_post_ra>
